<compile_context>
chip_gen: v7x
topology: tpu7x:2x2x1
jax: 0.10.0
libtpu: 0.0.40
codegen_flags: <defaults>
</compile_context>

<pallas_src>
import functools

import numpy as np
import jax
import jax.numpy as jnp
from jax import lax
from jax.experimental import pallas as pl
from jax.experimental.pallas import tpu as pltpu


def _round_up(n, m):
    return ((n + m - 1) // m) * m


def _pick_tile(n_pad, target):
    """Largest multiple of 128 that is <= target and divides n_pad (n_pad % 128 == 0)."""
    t = max(128, min(int(target), n_pad))
    t = (t // 128) * 128
    while n_pad % t:
        t -= 128
    return t


def _sage_layer_kernel(adj_ref, xw1_ref, xw1_self_ref, inv_deg_ref, norm_src_ref,
                       b1_ref, h_ref, acc_ref):
    """Pass 1: SAGEConv('gcn') + tanh, source-side GraphConv 'both' norm folded in.

    h_scaled[i] = tanh( ((A @ (xW1))[i] + (xW1)[i]) / (in_deg[i]+1) + b1 ) * D_out[i]^{-1/2}

    Grid = (row tile i, contraction tile k); k is the reduction axis ('arbitrary').
    """
    k = pl.program_id(1)

    @pl.when(k == 0)
    def _():
        acc_ref[...] = jnp.zeros_like(acc_ref)

    # Only MXU work per contraction step: adj tile never touches VALU/XLU.
    acc_ref[...] += jnp.dot(adj_ref[...], xw1_ref[...],
                            preferred_element_type=jnp.float32)

    @pl.when(k == pl.num_programs(1) - 1)
    def _():
        pre = (acc_ref[...] + xw1_self_ref[...].astype(jnp.float32)) \
              * inv_deg_ref[...] + b1_ref[...]
        # norm_src is zero on padded rows -> padded h_scaled rows are exactly 0.
        h_ref[...] = (jnp.tanh(pre) * norm_src_ref[...]).astype(h_ref.dtype)


def _graphconv_head_kernel(adj_ref, hsc_ref, w_ms_ref, eps_ref, norm_dst_ref,
                           out_ref, acc_ref, *, latent_pad):
    """Pass 2: fused GraphConv(norm='both', bias=False) mean/std heads + reparameterize.

    hsc already carries the source-side D_out^{-1/2} scaling (folded into pass 1).
    """
    k = pl.program_id(1)

    @pl.when(k == 0)
    def _():
        acc_ref[...] = jnp.zeros_like(acc_ref)

    acc_ref[...] += jnp.dot(adj_ref[...], hsc_ref[...],
                            preferred_element_type=jnp.float32)

    @pl.when(k == pl.num_programs(1) - 1)
    def _():
        agg = acc_ref[...] * norm_dst_ref[...]                  # D_in^{-1/2} (A hsc)
        ms = jnp.dot(agg.astype(w_ms_ref.dtype), w_ms_ref[...],
                     preferred_element_type=jnp.float32)        # [TN, 2*Lp]
        # m/s split lands exactly on a 128-lane boundary (latent_pad = 128*c).
        m = ms[:, :latent_pad]
        s = jnp.maximum(ms[:, latent_pad:], 0.0) + 1e-4
        z = eps_ref[...] * s + m
        # Pack z|m|s into one lane-dense slab -> single unmasked HBM writeback.
        out_ref[:, 0 * latent_pad:1 * latent_pad] = z
        out_ref[:, 1 * latent_pad:2 * latent_pad] = m
        out_ref[:, 2 * latent_pad:3 * latent_pad] = s


def multi_layer_sage_forward(adj, x, w1, b1, wm, ws, eps, *,
                             dot_dtype=jnp.bfloat16,
                             tile_rows=256, tile_k=512,
                             vmem_budget_bytes=48 << 20,
                             vmem_limit_bytes=None):
    """Forward pass of multi_layer_SAGE (single SAGE layer + VAE head).

    vmem_budget_bytes defaults to 48 MiB: fits v7x's 64 MiB/TC with headroom and
    is above the 16/32 MiB default scoped limits on v5e/v6e (raised explicitly via
    vmem_limit_bytes). On v6e/v5e you may raise the budget and sweep tile_rows up
    to 512-1024 for medium graphs.
    """
    dot_dtype = np.dtype(dot_dtype)
    dbytes = dot_dtype.itemsize
    n, f_in = x.shape
    hidden = w1.shape[1]
    latent = wm.shape[1]
    hidden_pad = _round_up(hidden, 128)      # lane-dense pass-1 output
    latent_pad = _round_up(latent, 128)      # lane-dense z/m/s segments

    # ---- node-dimension padding (lane aligned for both row and contraction tiles) ----
    n_pad = _round_up(n, 128)
    pad_n = n_pad - n

    # ---- pick (tn, tk) from the per-TensorCore VMEM budget ----
    tn = _pick_tile(n_pad, tile_rows)
    tk = _pick_tile(n_pad, tile_k)

    def vmem_est(tn_, tk_):
        pass1 = (2 * tn_ * tk_ * dbytes              # adj tile (double-buffered)
                 + 2 * tk_ * hidden_pad * dbytes     # xW1 contraction block
                 + 2 * tn_ * hidden_pad * dbytes     # xW1 self rows (1 DMA per i)
                 + 2 * tn_ * hidden_pad * dbytes     # h_scaled output block
                 + tn_ * hidden_pad * 4              # f32 accumulator scratch
                 + 4 * tn_ * 4 + 2 * hidden_pad * 4)
        pass2 = (2 * tn_ * tk_ * dbytes
                 + 2 * tk_ * hidden_pad * dbytes
                 + 2 * hidden_pad * 2 * latent_pad * dbytes
                 + 2 * tn_ * latent_pad * 4          # eps
                 + 2 * tn_ * 4                       # norm_dst
                 + 2 * tn_ * 3 * latent_pad * 4      # packed output
                 + tn_ * hidden_pad * 4)
        return max(pass1, pass2)

    while vmem_est(tn, tk) > vmem_budget_bytes and tk > 128:
        tk = _pick_tile(n_pad, tk - 128)
    while vmem_est(tn, tk) > vmem_budget_bytes and tn > 128:
        tn = _pick_tile(n_pad, tn - 128)

    grid = (n_pad // tn, n_pad // tk)

    # ---- degree vectors from the ORIGINAL f32 adjacency (exact accumulation) ----
    adj_f32 = adj.astype(jnp.float32)
    in_deg = jnp.sum(adj_f32, axis=1, keepdims=True)           # [N,1]
    out_deg = jnp.sum(adj_f32, axis=0)[:, None]                # [N,1]
    inv_deg_p = jnp.pad(1.0 / (in_deg + 1.0), ((0, pad_n), (0, 0)),
                        constant_values=1.0)
    norm_dst_p = jnp.pad(lax.rsqrt(jnp.maximum(in_deg, 1.0)), ((0, pad_n), (0, 0)))
    # Zero-pad norm_src so padded h_scaled rows are exactly zero (no tanh(b1) junk).
    norm_src_p = jnp.pad(lax.rsqrt(jnp.maximum(out_deg, 1.0)), ((0, pad_n), (0, 0)))

    # ---- MXU operands: cast to dot_dtype BEFORE padding (no extra N^2 f32 copy) ----
    adj_c = jnp.pad(adj.astype(dot_dtype), ((0, pad_n), (0, pad_n)))

    # ---- restructure pass 1 as A @ (x @ W1): tiny wrapper matmul, lane-dense ----
    w1_p = jnp.pad(w1.astype(jnp.float32), ((0, 0), (0, hidden_pad - hidden)))
    xw1 = jnp.pad(x.astype(jnp.float32) @ w1_p,
                  ((0, pad_n), (0, 0))).astype(dot_dtype)      # [Np, Hp]
    b1_p = jnp.pad(jnp.reshape(b1, (1, hidden)).astype(jnp.float32),
                   ((0, 0), (0, hidden_pad - hidden)))

    # Fused [Wm | Ws], each segment padded to a 128-lane boundary.
    wm_p = jnp.pad(wm.astype(jnp.float32),
                   ((0, hidden_pad - hidden), (0, latent_pad - latent)))
    ws_p = jnp.pad(ws.astype(jnp.float32),
                   ((0, hidden_pad - hidden), (0, latent_pad - latent)))
    w_ms = jnp.concatenate([wm_p, ws_p], axis=1).astype(dot_dtype)  # [Hp, 2*Lp]
    eps_p = jnp.pad(eps.astype(jnp.float32),
                    ((0, pad_n), (0, latent_pad - latent)))

    if vmem_limit_bytes is None:
        vmem_limit_bytes = int(vmem_budget_bytes)
    compiler_params = pltpu.CompilerParams(
        dimension_semantics=("parallel", "arbitrary"),   # rows shard over TCs; k = reduction
        vmem_limit_bytes=vmem_limit_bytes)

    # ---- pass 1: SAGEConv('gcn') + tanh, source-normalized hidden state ----
    cost1 = pl.CostEstimate(
        flops=int(2 * n_pad * n_pad * hidden_pad),
        transcendentals=int(n_pad * hidden_pad),
        bytes_accessed=int(dbytes * (n_pad * n_pad + 3 * n_pad * hidden_pad)
                           + 4 * (3 * n_pad + hidden_pad)))
    h_scaled = pl.pallas_call(
        _sage_layer_kernel,
        out_shape=jax.ShapeDtypeStruct((n_pad, hidden_pad), dot_dtype),
        grid=grid,
        in_specs=[
            pl.BlockSpec((tn, tk), lambda i, k: (i, k)),          # adj tile
            pl.BlockSpec((tk, hidden_pad), lambda i, k: (k, 0)),  # xW1 contraction rows
            pl.BlockSpec((tn, hidden_pad), lambda i, k: (i, 0)),  # xW1 self rows (const in k)
            pl.BlockSpec((tn, 1), lambda i, k: (i, 0)),           # 1/(in_deg+1)
            pl.BlockSpec((tn, 1), lambda i, k: (i, 0)),           # D_out^{-1/2}
            pl.BlockSpec((1, hidden_pad), lambda i, k: (0, 0)),   # b1
        ],
        out_specs=pl.BlockSpec((tn, hidden_pad), lambda i, k: (i, 0)),
        scratch_shapes=[pltpu.VMEM((tn, hidden_pad), jnp.float32)],
        compiler_params=compiler_params,
        cost_estimate=cost1,
    )(adj_c, xw1, xw1, inv_deg_p, norm_src_p, b1_p)

    # ---- pass 2: fused GraphConv mean/std heads + reparameterization ----
    cost2 = pl.CostEstimate(
        flops=int(2 * n_pad * n_pad * hidden_pad
                  + 2 * n_pad * hidden_pad * 2 * latent_pad),
        transcendentals=0,
        bytes_accessed=int(dbytes * (n_pad * n_pad + n_pad * hidden_pad
                                     + hidden_pad * 2 * latent_pad)
                           + 4 * (n_pad * latent_pad + n_pad
                                  + n_pad * 3 * latent_pad)))
    packed = pl.pallas_call(
        functools.partial(_graphconv_head_kernel, latent_pad=latent_pad),
        out_shape=jax.ShapeDtypeStruct((n_pad, 3 * latent_pad), jnp.float32),
        grid=grid,
        in_specs=[
            pl.BlockSpec((tn, tk), lambda i, k: (i, k)),              # adj tile
            pl.BlockSpec((tk, hidden_pad), lambda i, k: (k, 0)),      # h * D_out^{-1/2}
            pl.BlockSpec((hidden_pad, 2 * latent_pad), lambda i, k: (0, 0)),  # [Wm|Ws]
            pl.BlockSpec((tn, latent_pad), lambda i, k: (i, 0)),      # eps rows
            pl.BlockSpec((tn, 1), lambda i, k: (i, 0)),               # D_in^{-1/2}
        ],
        out_specs=pl.BlockSpec((tn, 3 * latent_pad), lambda i, k: (i, 0)),
        scratch_shapes=[pltpu.VMEM((tn, hidden_pad), jnp.float32)],
        compiler_params=compiler_params,
        cost_estimate=cost2,
    )(adj_c, h_scaled, w_ms, eps_p, norm_dst_p)

    z = packed[:n, 0 * latent_pad:0 * latent_pad + latent]
    m = packed[:n, 1 * latent_pad:1 * latent_pad + latent]
    s = packed[:n, 2 * latent_pad:2 * latent_pad + latent]
    return z, m, s


if __name__ == "__main__":
    N, F_IN, HIDDEN, LATENT = 16, 16, 64, 32   # in_feature=16, layers=[64], latent_dim=32

    key = jax.random.PRNGKey(0)
    k1, k2, k3, k4, k5, k6 = jax.random.split(key, 6)

    # Deterministic symmetric 0/1 adjacency with self-loops.
    a = (jax.random.uniform(k1, (N, N)) < 0.3).astype(jnp.float32)
    adj = jnp.maximum(jnp.maximum(a, a.T), jnp.eye(N, dtype=jnp.float32))
    x = jax.random.normal(k2, (N, F_IN), dtype=jnp.float32)

    # Parameters (SAGEConv fc_neigh weight stored transposed: [in, out]).
    w1 = 0.1 * jax.random.normal(k3, (F_IN, HIDDEN), dtype=jnp.float32)
    b1 = jnp.zeros((1, HIDDEN), dtype=jnp.float32)
    wm = 0.1 * jax.random.normal(k4, (HIDDEN, LATENT), dtype=jnp.float32)   # q_z_mean
    ws = 0.1 * jax.random.normal(k5, (HIDDEN, LATENT), dtype=jnp.float32)   # q_z_std
    eps = jax.random.normal(k6, (N, LATENT), dtype=jnp.float32)             # randn_like(std)

    # Pure-JAX (f32) reference matching the PyTorch forward.
    def ref(adj, x):
        in_deg = adj.sum(1, keepdims=True)
        h = jnp.tanh(((adj @ x + x) / (in_deg + 1.0)) @ w1 + b1)            # dropout(0) == id
        norm_src = lax.rsqrt(jnp.maximum(adj.sum(0, keepdims=True).T, 1.0))
        norm_dst = lax.rsqrt(jnp.maximum(in_deg, 1.0))
        agg = norm_dst * (adj @ (h * norm_src))
        mm = agg @ wm
        ss = jnp.maximum(agg @ ws, 0.0) + 1e-4
        return eps * ss + mm, mm, ss

    zr, mr, sr = ref(adj, x)

    # 1) Exact f32 path — tight check against the reference.
    z32, m32, s32 = jax.block_until_ready(
        multi_layer_sage_forward(adj, x, w1, b1, wm, ws, eps,
                                 dot_dtype=jnp.float32))
    assert jnp.allclose(m32, mr, atol=1e-4, rtol=1e-4)
    assert jnp.allclose(s32, sr, atol=1e-4, rtol=1e-4)
    assert jnp.allclose(z32, zr, atol=1e-4, rtol=1e-4)

    # 2) Fast path — bf16 MXU operands, f32 accumulation (bf16-level tolerance).
    z, m, s = jax.block_until_ready(
        multi_layer_sage_forward(adj, x, w1, b1, wm, ws, eps,
                                 dot_dtype=jnp.bfloat16))
    assert jnp.allclose(m, mr, atol=5e-2, rtol=5e-2)
    assert jnp.allclose(s, sr, atol=5e-2, rtol=5e-2)
    assert jnp.allclose(z, zr, atol=5e-2, rtol=5e-2)

    print("KERNEL_OK")
</pallas_src>

<mosaic_0001>
module attributes {stable_mosaic.version = 11 : i64} {
  func.func @_sage_layer_kernel(%arg0: i32, %arg1: i32, %arg2: memref<128x128xf32, #tpu.memory_space<vmem>>, %arg3: memref<128x128xf32, #tpu.memory_space<vmem>>, %arg4: memref<128x128xf32, #tpu.memory_space<vmem>>, %arg5: memref<128x1xf32, #tpu.memory_space<vmem>>, %arg6: memref<128x1xf32, #tpu.memory_space<vmem>>, %arg7: memref<1x128xf32, #tpu.memory_space<vmem>>, %arg8: memref<128x128xf32, #tpu.memory_space<vmem>>, %arg9: memref<128x128xf32, #tpu.memory_space<vmem>>) attributes {dimension_semantics = [#tpu.dimension_semantics<parallel>, #tpu.dimension_semantics<arbitrary>], iteration_bounds = array<i64: 1, 1>, scalar_prefetch = 0 : i64, scratch_operands = 1 : i64, tpu.core_type = #tpu.core_type<tc>, window_params = [{transform_indices = @transform_0, window_bounds = array<i64: 128, 128>}, {transform_indices = @transform_1, window_bounds = array<i64: 128, 128>}, {transform_indices = @transform_2, window_bounds = array<i64: 128, 128>}, {transform_indices = @transform_3, window_bounds = array<i64: 128, 1>}, {transform_indices = @transform_4, window_bounds = array<i64: 128, 1>}, {pipeline_mode = #tpu.pipeline_mode<synchronous>, transform_indices = @transform_5, window_bounds = array<i64: 1, 128>}, {transform_indices = @transform_6, window_bounds = array<i64: 128, 128>}]} {
    %c0_i32 = arith.constant 0 : i32
    %0 = arith.cmpi eq, %arg1, %c0_i32 : i32
    %1 = arith.extui %0 : i1 to i32
    %c0_i32_0 = arith.constant 0 : i32
    %2 = arith.cmpi ne, %1, %c0_i32_0 : i32
    scf.if %2 {
      %cst_10 = arith.constant 0.000000e+00 : f32
      %12 = vector.broadcast %cst_10 : f32 to vector<128x128xf32>
      %c0_11 = arith.constant 0 : index
      %c0_12 = arith.constant 0 : index
      %13 = vector.load %arg9[%c0_11, %c0_12] : memref<128x128xf32, #tpu.memory_space<vmem>>, vector<128x128xf32>
      tpu.vector_store %arg9[%c0_11, %c0_12], %12 {strides = array<i32>} : memref<128x128xf32, #tpu.memory_space<vmem>>, vector<128x128xf32>,
    } else {
    }
    %c0 = arith.constant 0 : index
    %c0_1 = arith.constant 0 : index
    %3 = vector.load %arg9[%c0, %c0_1] : memref<128x128xf32, #tpu.memory_space<vmem>>, vector<128x128xf32>
    %c0_2 = arith.constant 0 : index
    %c0_3 = arith.constant 0 : index
    %4 = vector.load %arg2[%c0_2, %c0_3] : memref<128x128xf32, #tpu.memory_space<vmem>>, vector<128x128xf32>
    %c0_4 = arith.constant 0 : index
    %c0_5 = arith.constant 0 : index
    %5 = vector.load %arg3[%c0_4, %c0_5] : memref<128x128xf32, #tpu.memory_space<vmem>>, vector<128x128xf32>
    %cst = arith.constant dense<0.000000e+00> : vector<128x128xf32>
    %6 = tpu.matmul %4, %5, %cst {dimension_numbers = #tpu.dot_dimension_numbers<[1], [0], [0], [1], [0, 0, 1, 1], [], []>} : vector<128x128xf32>, vector<128x128xf32>, vector<128x128xf32> -> vector<128x128xf32>
    %7 = arith.addf %3, %6 : vector<128x128xf32>
    %c0_6 = arith.constant 0 : index
    %c0_7 = arith.constant 0 : index
    %8 = vector.load %arg9[%c0_6, %c0_7] : memref<128x128xf32, #tpu.memory_space<vmem>>, vector<128x128xf32>
    tpu.vector_store %arg9[%c0_6, %c0_7], %7 {strides = array<i32>} : memref<128x128xf32, #tpu.memory_space<vmem>>, vector<128x128xf32>,
    %c0_i32_8 = arith.constant 0 : i32
    %9 = arith.cmpi eq, %arg1, %c0_i32_8 : i32
    %10 = arith.extui %9 : i1 to i32
    %c0_i32_9 = arith.constant 0 : i32
    %11 = arith.cmpi ne, %10, %c0_i32_9 : i32
    scf.if %11 {
      %c0_10 = arith.constant 0 : index
      %c0_11 = arith.constant 0 : index
      %12 = vector.load %arg9[%c0_10, %c0_11] : memref<128x128xf32, #tpu.memory_space<vmem>>, vector<128x128xf32>
      %c0_12 = arith.constant 0 : index
      %c0_13 = arith.constant 0 : index
      %13 = vector.load %arg4[%c0_12, %c0_13] : memref<128x128xf32, #tpu.memory_space<vmem>>, vector<128x128xf32>
      %14 = arith.addf %12, %13 : vector<128x128xf32>
      %c0_14 = arith.constant 0 : index
      %c0_15 = arith.constant 0 : index
      %15 = vector.load %arg5[%c0_14, %c0_15] : memref<128x1xf32, #tpu.memory_space<vmem>>, vector<128x1xf32>
      %16 = vector.broadcast %15 : vector<128x1xf32> to vector<128x128xf32>
      %17 = arith.mulf %14, %16 : vector<128x128xf32>
      %c0_16 = arith.constant 0 : index
      %c0_17 = arith.constant 0 : index
      %18 = vector.load %arg7[%c0_16, %c0_17] : memref<1x128xf32, #tpu.memory_space<vmem>>, vector<1x128xf32>
      %19 = vector.broadcast %18 : vector<1x128xf32> to vector<128x128xf32>
      %20 = arith.addf %17, %19 : vector<128x128xf32>
      %21 = math.tanh %20 : vector<128x128xf32>
      %c0_18 = arith.constant 0 : index
      %c0_19 = arith.constant 0 : index
      %22 = vector.load %arg6[%c0_18, %c0_19] : memref<128x1xf32, #tpu.memory_space<vmem>>, vector<128x1xf32>
      %23 = vector.broadcast %22 : vector<128x1xf32> to vector<128x128xf32>
      %24 = arith.mulf %21, %23 : vector<128x128xf32>
      %c0_20 = arith.constant 0 : index
      %c0_21 = arith.constant 0 : index
      %25 = vector.load %arg8[%c0_20, %c0_21] : memref<128x128xf32, #tpu.memory_space<vmem>>, vector<128x128xf32>
      tpu.vector_store %arg8[%c0_20, %c0_21], %24 {strides = array<i32>} : memref<128x128xf32, #tpu.memory_space<vmem>>, vector<128x128xf32>,
    } else {
    }
    return
  }
  func.func @transform_0(%arg0: i32, %arg1: i32) -> (i32, i32) {
    %c0_i32 = arith.constant 0 : i32
    return %arg0, %arg1 : i32, i32
  }
  func.func @transform_1(%arg0: i32, %arg1: i32) -> (i32, i32) {
    %c0_i32 = arith.constant 0 : i32
    %c0_i32_0 = arith.constant 0 : i32
    return %arg1, %c0_i32 : i32, i32
  }
  func.func @transform_2(%arg0: i32, %arg1: i32) -> (i32, i32) {
    %c0_i32 = arith.constant 0 : i32
    %c0_i32_0 = arith.constant 0 : i32
    return %arg0, %c0_i32 : i32, i32
  }
  func.func @transform_3(%arg0: i32, %arg1: i32) -> (i32, i32) {
    %c0_i32 = arith.constant 0 : i32
    %c0_i32_0 = arith.constant 0 : i32
    return %arg0, %c0_i32 : i32, i32
  }
  func.func @transform_4(%arg0: i32, %arg1: i32) -> (i32, i32) {
    %c0_i32 = arith.constant 0 : i32
    %c0_i32_0 = arith.constant 0 : i32
    return %arg0, %c0_i32 : i32, i32
  }
  func.func @transform_5(%arg0: i32, %arg1: i32) -> (i32, i32) {
    %c0_i32 = arith.constant 0 : i32
    %c0_i32_0 = arith.constant 0 : i32
    %c0_i32_1 = arith.constant 0 : i32
    return %c0_i32, %c0_i32_0 : i32, i32
  }
  func.func @transform_6(%arg0: i32, %arg1: i32) -> (i32, i32) {
    %c0_i32 = arith.constant 0 : i32
    %c0_i32_0 = arith.constant 0 : i32
    return %arg0, %c0_i32 : i32, i32
  }
}

</mosaic_0001>

<bundles_post_ra>
// kernel: tpu_custom_call.1
= control target key start
LH: loop header
LB: loop body
LE: loop exit
PB: predicated region body
PF: predicated region fallthrough
CT: control target
= control target key end

     0   :  { %11 = vsyncpa [#allocation4], 0  ;;  %s1188_s0 = inlined_call_operand.vmem [shape: f32[128,128], index: 0, kind: input, shape index: {}]   ;;  %s1189_s1 = inlined_call_operand.vmem [shape: f32[128,128], index: 1, kind: input, shape index: {}]   ;;  %s1190_s2 = inlined_call_operand.hbm [shape: f32[128,128], index: 2, kind: input, shape index: {}]   ;;  %s1191_s3 = inlined_call_operand.vmem [shape: f32[128,1], index: 3, kind: input, shape index: {}]   ;;  %s1192_s4 = inlined_call_operand.vmem [shape: f32[128,1], index: 4, kind: input, shape index: {}]   ;;  %s1193_s5 = inlined_call_operand.vmem [shape: f32[1,128], index: 5, kind: input, shape index: {}]   ;;  %s1194_s6 = inlined_call_operand.hbm [shape: f32[128,128], index: 6, kind: output, shape index: {}]  }
   0x1   :  { %12 = vsyncpa [#allocation5], 0  ;;  %s854_s21 = smov [#allocation3]   ;;  %s806_s25 = scalar_lea.hbm %s1190_s2, 2048 }
   0x2   :  { %s22_s22 = sshll.u32 %s854_s21, 4  ;;  %p807_p0 = scmp.ne.s32.totalorder %s1190_s2, %s806_s25  ;;  %s23_s22 = int_to_ptr.vmem [resolvable:$true] %s22_s22 }
   0x3   :  { %p810_p1 = scmp.lt.u32.totalorder %s806_s25, %s1190_s2 }
   0x5   :  { %p812_p2 = pnand %p810_p1, %p807_p0 }
   0x7   :  { %815 = shalt.err (!%p812_p2)
}
   0x8   :  { %s816_s30 = scalar_lea.vmem %s23_s22, 2048  ;;  %p821_p4 = scmp.lt.s32.totalorder %s23_s22, %s23_s22 }
   0x9   :  { %p817_p3 = scmp.ne.s32.totalorder %s23_s22, %s816_s30  ;;  %p822_p5 = scmp.lt.s32.totalorder %s816_s30, %s816_s30 }
   0xb   :  { %p823_p6 = por %p822_p5, %p821_p4 }
   0xd   :  { %p824_p7 = pnand %p823_p6, %p817_p3 }
   0xf   :  { %827 = shalt.err (!%p824_p7)
}
  0x10   :  { %s855_s7 = smov 128   ;;  %s856_s8 = smov 8  }
  0x11   :  { %28 = dma.hbm_to_vmem [thread:$0]  %s1190_s2, 2048, %s23_s22, [#allocation4], %s855_s7, %s855_s7, %s856_s8  }
  0x12   :  { %850 = dma.done.wait [#allocation4], 2048  }
  0x13   :  { %851 = vsyncadd [#allocation4], 4294965248  ;;  %v857_v0 = vmov 0   ;;  %v90_v1 = vld [vmem:[%s1189_s1] sm:$0xff]  ;;  %v91_v2 = vld [vmem:[%s1189_s1 + $0x8] sm:$0xff] }
  0x14   :  { %773 = vset.pattern.permute.xlu1 %v857_v0  ;;  %772 = vset.pattern.permute.xlu0 %v857_v0  ;;  %v92_v3 = vld [vmem:[%s1189_s1 + $0x10] sm:$0xff]  ;;  %v719_v4 = vpack.c.bf16 %v91_v2, %v90_v1  ;;  %v93_v5 = vld [vmem:[%s1189_s1 + $0x18] sm:$0xff]  ;;  %v94_v7 = vld [vmem:[%s1189_s1 + $0x20] sm:$0xff] }
  0x15   :  { %v723_v6 = vpack.c.bf16 %v93_v5, %v92_v3  ;;  %v95_v8 = vld [vmem:[%s1189_s1 + $0x28] sm:$0xff]  ;;  %v336_v9 = vld [vmem:[%s1191_s3 + $0x10] sm:$0xff]  ;;  %v334_v11 = vld [vmem:[%s1191_s3] sm:$0xff] }
  0x16   :  { %720 = vmatprep.subr.bf16.mxu0 %v719_v4  ;;  %751 = vmatprep.subr.bf16.mxu1 %v719_v4  ;;  %v727_v10 = vpack.c.bf16 %v95_v8, %v94_v7  ;;  %v96_v12 = vld [vmem:[%s1189_s1 + $0x30] sm:$0xff]  ;;  %v97_v13 = vld [vmem:[%s1189_s1 + $0x38] sm:$0xff]  ;;  %v74_v14 = vld [vmem:[%s1188_s0] sm:$0xff] }
  0x17   :  { %722 = vmatpush3.bf16.msra.mxu0 %v719_v4  ;;  %759 = vmatpush3.bf16.msra.mxu1 %v719_v4  ;;  %v337_v15 = vld [vmem:[%s1191_s3 + $0x18] sm:$0xff]  ;;  %v335_v16 = vld [vmem:[%s1191_s3 + $0x8] sm:$0xff]  ;;  %v82_v17 = vld [vmem:[%s1188_s0 + $0x40] sm:$0xff]  ;;  %v731_v18 = vpack.c.bf16 %v97_v13, %v96_v12 }
  0x18   :  { %724 = vmatprep.subr.bf16.mxu0 %v723_v6  ;;  %752 = vmatprep.subr.bf16.mxu1 %v723_v6  ;;  %v98_v19 = vld [vmem:[%s1189_s1 + $0x40] sm:$0xff]  ;;  %v99_v20 = vld [vmem:[%s1189_s1 + $0x48] sm:$0xff]  ;;  %v100_v24 = vld [vmem:[%s1189_s1 + $0x50] sm:$0xff] }
  0x19   :  { %362 = vperm.xlu1 %773, %v336_v9   ;;  %352 = vperm.xlu0 %772, %v334_v11   ;;  %v339_v21 = vld [vmem:[%s1191_s3 + $0x28] sm:$0xff]  ;;  %v338_v22 = vld [vmem:[%s1191_s3 + $0x20] sm:$0xff]  ;;  %v735_v23 = vpack.c.bf16 %v99_v20, %v98_v19  ;;  %v101_v25 = vld [vmem:[%s1189_s1 + $0x58] sm:$0xff] }
  0x1a   :  { %695 = vmatprep.mubr.f32.mxu0 %v74_v14  ;;  %707 = vmatprep.mubr.f32.mxu1 %v82_v17  ;;  %v341_v26 = vld [vmem:[%s1191_s3 + $0x38] sm:$0xff]  ;;  %v340_v27 = vld [vmem:[%s1191_s3 + $0x30] sm:$0xff]  ;;  %v739_v28 = vpack.c.bf16 %v101_v25, %v100_v24  ;;  %v102_v29 = vld [vmem:[%s1189_s1 + $0x60] sm:$0xff] }
  0x1b   :  { %726 = vmatpush3.bf16.msra.mxu0 %v723_v6  ;;  %760 = vmatpush3.bf16.msra.mxu1 %v723_v6  ;;  %v103_v30 = vld [vmem:[%s1189_s1 + $0x68] sm:$0xff]  ;;  %v342_v32 = vld [vmem:[%s1191_s3 + $0x40] sm:$0xff]  ;;  %v104_v34 = vld [vmem:[%s1189_s1 + $0x70] sm:$0xff] }
  0x1c   :  { %728 = vmatprep.subr.bf16.mxu0 %v727_v10  ;;  %753 = vmatprep.subr.bf16.mxu1 %v727_v10  ;;  %v343_v31 = vld [vmem:[%s1191_s3 + $0x48] sm:$0xff]  ;;  %v743_v33 = vpack.c.bf16 %v103_v30, %v102_v29  ;;  %v105_v35 = vld [vmem:[%s1189_s1 + $0x78] sm:$0xff]  ;;  %v344_v37 = vld [vmem:[%s1191_s3 + $0x50] sm:$0xff] }
  0x1d   :  { %367 = vperm.xlu1 %773, %v337_v15   ;;  %357 = vperm.xlu0 %772, %v335_v16   ;;  %v345_v36 = vld [vmem:[%s1191_s3 + $0x58] sm:$0xff]  ;;  %v747_v38 = vpack.c.bf16 %v105_v35, %v104_v34  ;;  %v347_v39 = vld [vmem:[%s1191_s3 + $0x68] sm:$0xff]  ;;  %v346_v40 = vld [vmem:[%s1191_s3 + $0x60] sm:$0xff] }
  0x1e   :  { %v349_v41 = vld [vmem:[%s1191_s3 + $0x78] sm:$0xff]  ;;  %v348_v42 = vld [vmem:[%s1191_s3 + $0x70] sm:$0xff]  ;;  %v75_v43 = vld [vmem:[%s1188_s0 + $0x8] sm:$0xff] }
  0x1f   :  { %730 = vmatpush3.bf16.msra.mxu0 %v727_v10  ;;  %761 = vmatpush3.bf16.msra.mxu1 %v727_v10  ;;  %v83_v44 = vld [vmem:[%s1188_s0 + $0x48] sm:$0xff]  ;;  %v76_v45 = vld [vmem:[%s1188_s0 + $0x10] sm:$0xff]  ;;  %v485_v48 = vld [vmem:[%s1192_s4] sm:$0xff] }
  0x20   :  { %732 = vmatprep.subr.bf16.mxu0 %v731_v18  ;;  %754 = vmatprep.subr.bf16.mxu1 %v731_v18  ;;  %v84_v46 = vld [vmem:[%s1188_s0 + $0x50] sm:$0xff]  ;;  %v486_v47 = vld [vmem:[%s1192_s4 + $0x8] sm:$0xff]  ;;  %v77_v49 = vld [vmem:[%s1188_s0 + $0x18] sm:$0xff] }
  0x21   :  { %377 = vperm.xlu1 %773, %v339_v21   ;;  %372 = vperm.xlu0 %772, %v338_v22   ;;  %v85_v50 = vld [vmem:[%s1188_s0 + $0x58] sm:$0xff]  ;;  %v78_v51 = vld [vmem:[%s1188_s0 + $0x20] sm:$0xff]  ;;  %v487_v54 = vld [vmem:[%s1192_s4 + $0x10] sm:$0xff] }
  0x22   :  { %v86_v52 = vld [vmem:[%s1188_s0 + $0x60] sm:$0xff]  ;;  %v488_v53 = vld [vmem:[%s1192_s4 + $0x18] sm:$0xff]  ;;  %v79_v55 = vld [vmem:[%s1188_s0 + $0x28] sm:$0xff] }
  0x23   :  { %734 = vmatpush3.bf16.msra.mxu0 %v731_v18  ;;  %762 = vmatpush3.bf16.msra.mxu1 %v731_v18  ;;  %v87_v56 = vld [vmem:[%s1188_s0 + $0x68] sm:$0xff]  ;;  %v80_v57 = vld [vmem:[%s1188_s0 + $0x30] sm:$0xff]  ;;  %v489_v60 = vld [vmem:[%s1192_s4 + $0x20] sm:$0xff] }
  0x24   :  { %736 = vmatprep.subr.bf16.mxu0 %v735_v23  ;;  %755 = vmatprep.subr.bf16.mxu1 %v735_v23  ;;  %v88_v58 = vld [vmem:[%s1188_s0 + $0x70] sm:$0xff]  ;;  %v490_v59 = vld [vmem:[%s1192_s4 + $0x28] sm:$0xff]  ;;  %v81_v61 = vld [vmem:[%s1188_s0 + $0x38] sm:$0xff] }
  0x25   :  { %387 = vperm.xlu1 %773, %v341_v26   ;;  %382 = vperm.xlu0 %772, %v340_v27   ;;  %v89_v62 = vld [vmem:[%s1188_s0 + $0x78] sm:$0xff]  ;;  %v491_v0 = vld [vmem:[%s1192_s4 + $0x30] sm:$0xff]  ;;  %v494_v1 = vld [vmem:[%s1192_s4 + $0x48] sm:$0xff] }
  0x26   :  { %v492_v63 = vld [vmem:[%s1192_s4 + $0x38] sm:$0xff]  ;;  %v493_v2 = vld [vmem:[%s1192_s4 + $0x40] sm:$0xff]  ;;  %v495_v4 = vld [vmem:[%s1192_s4 + $0x50] sm:$0xff] }
  0x27   :  { %738 = vmatpush3.bf16.msra.mxu0 %v735_v23  ;;  %763 = vmatpush3.bf16.msra.mxu1 %v735_v23  ;;  %v496_v3 = vld [vmem:[%s1192_s4 + $0x58] sm:$0xff]  ;;  %v498_v5 = vld [vmem:[%s1192_s4 + $0x68] sm:$0xff]  ;;  %v497_v6 = vld [vmem:[%s1192_s4 + $0x60] sm:$0xff] }
  0x28   :  { %740 = vmatprep.subr.bf16.mxu0 %v739_v28  ;;  %756 = vmatprep.subr.bf16.mxu1 %v739_v28  ;;  %v500_v7 = vld [vmem:[%s1192_s4 + $0x78] sm:$0xff]  ;;  %v499_v8 = vld [vmem:[%s1192_s4 + $0x70] sm:$0xff]  ;;  %v303_v30 = vld [vmem:[#allocation3 + $0x8] sm:$0xff] }
  0x29   :  { %397 = vperm.xlu1 %773, %v343_v31   ;;  %392 = vperm.xlu0 %772, %v342_v32   ;;  %v311_v31 = vld [vmem:[#allocation3 + $0x48] sm:$0xff]  ;;  %v310_v34 = vld [vmem:[#allocation3 + $0x40] sm:$0xff] }
  0x2b   :  { %742 = vmatpush3.bf16.msra.mxu0 %v739_v28  ;;  %764 = vmatpush3.bf16.msra.mxu1 %v739_v28 }
  0x2c   :  { %744 = vmatprep.subr.bf16.mxu0 %v743_v33  ;;  %757 = vmatprep.subr.bf16.mxu1 %v743_v33 }
  0x2d   :  { %407 = vperm.xlu1 %773, %v345_v36   ;;  %402 = vperm.xlu0 %772, %v344_v37  }
  0x2f   :  { %746 = vmatpush3.bf16.msra.mxu0 %v743_v33  ;;  %765 = vmatpush3.bf16.msra.mxu1 %v743_v33  ;;  %v302_v33 = vld [vmem:[#allocation3] sm:$0xff] }
  0x30   :  { %748 = vmatprep.subr.bf16.mxu0 %v747_v38  ;;  %758 = vmatprep.subr.bf16.mxu1 %v747_v38 }
  0x31   :  { %417 = vperm.xlu1 %773, %v347_v39   ;;  %412 = vperm.xlu0 %772, %v346_v40  }
  0x33   :  { %750 = vmatpush3.bf16.msra.mxu0 %v747_v38  ;;  %766 = vmatpush3.bf16.msra.mxu1 %v747_v38 }
  0x35   :  { %427 = vperm.xlu1 %773, %v349_v41   ;;  %422 = vperm.xlu0 %772, %v348_v42   ;;  %v1134_v41 = vld [vmem:[%s1193_s5] ss:$0 sm:$0xff]  ;;  %s858_s5 = smov [#allocation6]  }
  0x36   :  { %696 = vmatmul.mubr.f32.vlgmr.msra.gmra.mrb[0].mxu0 %v75_v43  ;;  %708 = vmatmul.mubr.f32.vlgmr.msra.gmra.mrb[0].mxu1 %v83_v44  ;;  %v305_v44 = vld [vmem:[#allocation3 + $0x18] sm:$0xff]  ;;  %s618_s2 = sshll.u32 %s858_s5, 4  ;;  %s619_s2 = int_to_ptr.vmem [resolvable:$true] %s618_s2 }
  0x37   :  { %698 = vmatprep.mubr.f32.mxu0 %v76_v45  ;;  %710 = vmatprep.mubr.f32.mxu1 %v84_v46  ;;  %v313_v45 = vld [vmem:[#allocation3 + $0x58] sm:$0xff]  ;;  %s828_s18 = scalar_lea.vmem %s619_s2, 2048  ;;  %p833_p9 = scmp.lt.s32.totalorder %s619_s2, %s619_s2 }
  0x38   :  { %p829_p8 = scmp.ne.s32.totalorder %s619_s2, %s828_s18  ;;  %p834_p10 = scmp.lt.s32.totalorder %s828_s18, %s828_s18 }
  0x39   :  { %508 = vperm.xlu1 %773, %v486_v47   ;;  %503 = vperm.xlu0 %772, %v485_v48  }
  0x3a   :  { %699 = vmatmul.mubr.f32.gmra.mrb[2].mxu0 %v77_v49  ;;  %711 = vmatmul.mubr.f32.gmra.mrb[2].mxu1 %v85_v50  ;;  %v304_v49 = vld [vmem:[#allocation3 + $0x10] sm:$0xff]  ;;  %p835_p11 = por %p834_p10, %p833_p9 }
  0x3b   :  { %701 = vmatprep.mubr.f32.mxu0 %v78_v51  ;;  %713 = vmatprep.mubr.f32.mxu1 %v86_v52  ;;  %v312_v50 = vld [vmem:[#allocation3 + $0x50] sm:$0xff] }
  0x3c   :  { %p836_p12 = pnand %p835_p11, %p829_p8 }
  0x3d   :  { %518 = vperm.xlu1 %773, %v488_v53   ;;  %513 = vperm.xlu0 %772, %v487_v54  }
  0x3e   :  { %702 = vmatmul.mubr.f32.gmra.mrb[4].mxu0 %v79_v55  ;;  %714 = vmatmul.mubr.f32.gmra.mrb[4].mxu1 %v87_v56 }
  0x3f   :  { %704 = vmatprep.mubr.f32.mxu0 %v80_v57  ;;  %716 = vmatprep.mubr.f32.mxu1 %v88_v58 }
  0x41   :  { %528 = vperm.xlu1 %773, %v490_v59   ;;  %523 = vperm.xlu0 %772, %v489_v60  }
  0x42   :  { %705 = vmatmul.mubr.f32.gmra.mrb[6].mxu0 %v81_v61  ;;  %717 = vmatmul.mubr.f32.gmra.mrb[6].mxu1 %v89_v62 }
  0x45   :  { %538 = vperm.xlu1 %773, %v492_v63   ;;  %533 = vperm.xlu0 %772, %v491_v0  }
  0x49   :  { %548 = vperm.xlu1 %773, %v494_v1   ;;  %543 = vperm.xlu0 %772, %v493_v2   ;;  %v307_v1 = vld [vmem:[#allocation3 + $0x28] sm:$0xff] }
  0x4d   :  { %558 = vperm.xlu1 %773, %v496_v3   ;;  %553 = vperm.xlu0 %772, %v495_v4  }
  0x51   :  { %568 = vperm.xlu1 %773, %v498_v5   ;;  %563 = vperm.xlu0 %772, %v497_v6   ;;  %v315_v5 = vld [vmem:[#allocation3 + $0x68] sm:$0xff] }
  0x55   :  { %578 = vperm.xlu1 %773, %v500_v7   ;;  %573 = vperm.xlu0 %772, %v499_v8  }
  0x98   :  { %v1101_v9 = vpop.permute.xlu1 %362  ;;  %v353_v10 = vpop.permute.xlu0 %352 }
  0x9c   :  { %v368_v11 = vpop.permute.xlu1 %367  ;;  %v358_v12 = vpop.permute.xlu0 %357 }
  0xa0   :  { %v1103_v13 = vpop.permute.xlu1 %377  ;;  %v1105_v14 = vpop.permute.xlu0 %372 }
  0xa4   :  { %v1107_v15 = vpop.permute.xlu1 %387  ;;  %v1109_v16 = vpop.permute.xlu0 %382 }
  0xa8   :  { %v398_v17 = vpop.permute.xlu1 %397  ;;  %v393_v18 = vpop.permute.xlu0 %392 }
  0xac   :  { %v408_v19 = vpop.permute.xlu1 %407  ;;  %v403_v20 = vpop.permute.xlu0 %402 }
  0xb0   :  { %v1111_v21 = vpop.permute.xlu1 %417  ;;  %v1113_v22 = vpop.permute.xlu0 %412 }
  0xb4   :  { %v1115_v23 = vpop.permute.xlu1 %427  ;;  %v1117_v24 = vpop.permute.xlu0 %422 }
  0xb8   :  { %v1119_v25 = vpop.permute.xlu1 %508  ;;  %v1121_v26 = vpop.permute.xlu0 %503 }
  0xbc   :  { %v1123_v27 = vpop.permute.xlu1 %518  ;;  %v1125_v28 = vpop.permute.xlu0 %513 }
  0xc0   :  { %v1127_v29 = vpop.permute.xlu1 %528  ;;  %v1129_v32 = vpop.permute.xlu0 %523 }
  0xc4   :  { %v1136_v46 = vpop.permute.xlu1 %538  ;;  %v1142_v2 = vpop.permute.xlu0 %533 }
 0x109   :  { %v697_v35 = vpop.f32.mrb[0].mxu0  ;;  %v709_v36 = vpop.f32.mrb[0].mxu1 }
 0x10a   :  { %v319_v37 = vadd.f32 %v697_v35, %v303_v30  ;;  %v327_v38 = vadd.f32 %v709_v36, %v311_v31  ;;  %v172_v39 = vpop.f32.mrb[1].mxu0  ;;  %v212_v40 = vpop.f32.mrb[1].mxu1 }
 0x10b   :  { %v318_v42 = vadd.f32 %v302_v33, %v172_v39  ;;  %v326_v43 = vadd.f32 %v310_v34, %v212_v40  ;;  %v317_v39 = vld [vmem:[#allocation3 + $0x78] sm:$0xff] }
 0x10c   :  { %v431_v47 = vmul.f32 %v358_v12, %v319_v37  ;;  %v439_v48 = vmul.f32 %v398_v17, %v327_v38  ;;  %v306_v12 = vld [vmem:[#allocation3 + $0x20] sm:$0xff]  ;;  %v309_v38 = vld [vmem:[#allocation3 + $0x38] sm:$0xff] }
 0x10d   :  { %v430_v51 = vmul.f32 %v353_v10, %v318_v42  ;;  %v438_v52 = vmul.f32 %v393_v18, %v326_v43  ;;  %v700_v53 = vpop.f32.mrb[2].mxu0  ;;  %v712_v54 = vpop.f32.mrb[2].mxu1  ;;  %v314_v17 = vld [vmem:[#allocation3 + $0x60] sm:$0xff] }
 0x10e   :  { %v454_v55 = vadd.f32 %v1134_v41, %v431_v47  ;;  %v462_v56 = vadd.f32 %v1134_v41, %v439_v48  ;;  %v321_v57 = vadd.f32 %v700_v53, %v305_v44  ;;  %v329_v58 = vadd.f32 %v712_v54, %v313_v45  ;;  %v182_v59 = vpop.f32.mrb[3].mxu0  ;;  %v222_v60 = vpop.f32.mrb[3].mxu1  ;;  %v308_v44 = vld [vmem:[#allocation3 + $0x30] sm:$0xff] }
 0x10f   :  { %v453_v61 = vadd.f32 %v1134_v41, %v430_v51  ;;  %v461_v62 = vadd.f32 %v1134_v41, %v438_v52  ;;  %v320_v63 = vadd.f32 %v304_v49, %v182_v59  ;;  %v328_v0 = vadd.f32 %v312_v50, %v222_v60  ;;  %v544_v54 = vpop.permute.xlu0 %543 }
 0x110   :  { %774 = vtanh.f32 %v454_v55  ;;  %v433_v3 = vmul.f32 %v368_v11, %v321_v57  ;;  %v441_v4 = vmul.f32 %v408_v19, %v329_v58 }
 0x111   :  { %776 = vtanh.f32 %v462_v56  ;;  %v432_v6 = vmul.f32 %v1101_v9, %v320_v63  ;;  %v440_v7 = vmul.f32 %v403_v20, %v328_v0  ;;  %v703_v8 = vpop.f32.mrb[4].mxu0  ;;  %v715_v10 = vpop.f32.mrb[4].mxu1 }
 0x112   :  { %778 = vtanh.f32 %v453_v61  ;;  %v456_v18 = vadd.f32 %v1134_v41, %v433_v3  ;;  %v464_v30 = vadd.f32 %v1134_v41, %v441_v4  ;;  %v323_v31 = vadd.f32 %v703_v8, %v307_v1  ;;  %v192_v33 = vpop.f32.mrb[5].mxu0  ;;  %v232_v34 = vpop.f32.mrb[5].mxu1 }
 0x113   :  { %780 = vtanh.f32 %v461_v62  ;;  %v455_v11 = vadd.f32 %v1134_v41, %v432_v6  ;;  %v463_v19 = vadd.f32 %v1134_v41, %v440_v7  ;;  %v331_v35 = vadd.f32 %v715_v10, %v315_v5  ;;  %v549_v9 = vpop.permute.xlu1 %548  ;;  %v554_v6 = vpop.permute.xlu0 %553 }
 0x114   :  { %782 = vtanh.f32 %v456_v18  ;;  %v435_v20 = vmul.f32 %v1103_v13, %v323_v31  ;;  %v322_v36 = vadd.f32 %v306_v12, %v192_v33  ;;  %v330_v37 = vadd.f32 %v314_v17, %v232_v34  ;;  %v316_v13 = vld [vmem:[#allocation3 + $0x70] sm:$0xff] }
 0x115   :  { %784 = vtanh.f32 %v464_v30  ;;  %v443_v40 = vmul.f32 %v1111_v21, %v331_v35  ;;  %v706_v42 = vpop.f32.mrb[6].mxu0  ;;  %v718_v43 = vpop.f32.mrb[6].mxu1 }
 0x116   :  { %786 = vtanh.f32 %v455_v11  ;;  %v458_v45 = vadd.f32 %v1134_v41, %v435_v20  ;;  %v434_v47 = vmul.f32 %v1105_v14, %v322_v36  ;;  %v442_v48 = vmul.f32 %v1113_v22, %v330_v37  ;;  %v202_v49 = vpop.f32.mrb[7].mxu0  ;;  %v242_v50 = vpop.f32.mrb[7].mxu1 }
 0x117   :  { %788 = vtanh.f32 %v463_v19  ;;  %v466_v51 = vadd.f32 %v1134_v41, %v443_v40  ;;  %v325_v52 = vadd.f32 %v706_v42, %v309_v38  ;;  %v333_v53 = vadd.f32 %v718_v43, %v317_v39  ;;  %v559_v1 = vpop.permute.xlu1 %558  ;;  %v564_v11 = vpop.permute.xlu0 %563 }
 0x118   :  { %790 = vtanh.f32 %v458_v45  ;;  %v457_v21 = vadd.f32 %v1134_v41, %v434_v47  ;;  %v465_v55 = vadd.f32 %v1134_v41, %v442_v48  ;;  %v324_v56 = vadd.f32 %v308_v44, %v202_v49 }
 0x119   :  { %792 = vtanh.f32 %v466_v51  ;;  %v437_v14 = vmul.f32 %v1107_v15, %v325_v52  ;;  %v445_v22 = vmul.f32 %v1115_v23, %v333_v53  ;;  %v332_v57 = vadd.f32 %v316_v13, %v242_v50 }
 0x11a   :  { %v775_v58 = vpop.eup %774  ;;  %794 = vtanh.f32 %v457_v21  ;;  %v436_v59 = vmul.f32 %v1109_v16, %v324_v56 }
 0x11b   :  { %v777_v60 = vpop.eup %776  ;;  %v582_v61 = vmul.f32 %v775_v58, %v1119_v25  ;;  %796 = vtanh.f32 %v465_v55  ;;  %v460_v62 = vadd.f32 %v1134_v41, %v437_v14  ;;  %v468_v63 = vadd.f32 %v1134_v41, %v445_v22  ;;  %v569_v30 = vpop.permute.xlu1 %568 }
 0x11c   :  { %v779_v0 = vpop.eup %778  ;;  %v590_v3 = vmul.f32 %v777_v60, %v549_v9  ;;  %v459_v15 = vadd.f32 %v1134_v41, %v436_v59  ;;  %v444_v23 = vmul.f32 %v1117_v24, %v332_v57  ;;  %v574_v40 = vpop.permute.xlu0 %573 }
 0x11d   :  { %v781_v4 = vpop.eup %780  ;;  %598 = vst [vmem:[#allocation6 + $0x8] sm:$0xff] %v582_v61  ;;  %v581_v5 = vmul.f32 %v779_v0, %v1121_v26  ;;  %798 = vtanh.f32 %v460_v62 }
 0x11e   :  { %v783_v16 = vpop.eup %782  ;;  %606 = vst [vmem:[#allocation6 + $0x48] sm:$0xff] %v590_v3  ;;  %v589_v25 = vmul.f32 %v781_v4, %v544_v54  ;;  %800 = vtanh.f32 %v468_v63  ;;  %v467_v7 = vadd.f32 %v1134_v41, %v444_v23 }
 0x11f   :  { %v785_v8 = vpop.eup %784  ;;  %597 = vst [vmem:[#allocation6] sm:$0xff] %v581_v5  ;;  %v584_v10 = vmul.f32 %v783_v16, %v1123_v27  ;;  %802 = vtanh.f32 %v459_v15  ;;  %v579_v36 = vpop.permute.xlu1 %578 }
 0x120   :  { %v787_v12 = vpop.eup %786  ;;  %605 = vst [vmem:[#allocation6 + $0x40] sm:$0xff] %v589_v25  ;;  %v592_v24 = vmul.f32 %v785_v8, %v559_v1  ;;  %804 = vtanh.f32 %v467_v7 }
 0x121   :  { %v789_v17 = vpop.eup %788  ;;  %600 = vst [vmem:[#allocation6 + $0x18] sm:$0xff] %v584_v10  ;;  %v583_v26 = vmul.f32 %v787_v12, %v1125_v28 }
 0x122   :  { %v791_v18 = vpop.eup %790  ;;  %608 = vst [vmem:[#allocation6 + $0x58] sm:$0xff] %v592_v24  ;;  %v591_v31 = vmul.f32 %v789_v17, %v554_v6 }
 0x123   :  { %v793_v33 = vpop.eup %792  ;;  %599 = vst [vmem:[#allocation6 + $0x10] sm:$0xff] %v583_v26  ;;  %v586_v41 = vmul.f32 %v791_v18, %v1127_v29 }
 0x124   :  { %v795_v34 = vpop.eup %794  ;;  %607 = vst [vmem:[#allocation6 + $0x50] sm:$0xff] %v591_v31  ;;  %v594_v27 = vmul.f32 %v793_v33, %v569_v30 }
 0x125   :  { %v797_v19 = vpop.eup %796  ;;  %602 = vst [vmem:[#allocation6 + $0x28] sm:$0xff] %v586_v41  ;;  %v585_v35 = vmul.f32 %v795_v34, %v1129_v32 }
 0x126   :  { %610 = vst [vmem:[#allocation6 + $0x68] sm:$0xff] %v594_v27  ;;  %v593_v9 = vmul.f32 %v797_v19, %v564_v11 }
 0x127   :  { %v799_v20 = vpop.eup %798  ;;  %601 = vst [vmem:[#allocation6 + $0x20] sm:$0xff] %v585_v35 }
 0x128   :  { %v801_v28 = vpop.eup %800  ;;  %609 = vst [vmem:[#allocation6 + $0x60] sm:$0xff] %v593_v9  ;;  %v588_v37 = vmul.f32 %v799_v20, %v1136_v46 }
 0x129   :  { %v803_v29 = vpop.eup %802  ;;  %v596_v38 = vmul.f32 %v801_v28, %v579_v36 }
 0x12a   :  { %v805_v39 = vpop.eup %804  ;;  %604 = vst [vmem:[#allocation6 + $0x38] sm:$0xff] %v588_v37  ;;  %v587_v42 = vmul.f32 %v803_v29, %v1142_v2 }
 0x12b   :  { %612 = vst [vmem:[#allocation6 + $0x78] sm:$0xff] %v596_v38  ;;  %v595_v32 = vmul.f32 %v805_v39, %v574_v40 }
 0x12c   :  { %603 = vst [vmem:[#allocation6 + $0x30] sm:$0xff] %v587_v42 }
 0x12d   :  { %611 = vst [vmem:[#allocation6 + $0x70] sm:$0xff] %v595_v32 }
 0x12e   :  { %839 = shalt.err (!%p836_p12)
}
 0x12f   :  { %s840_s21 = scalar_lea.hbm %s1194_s6, 2048 }
 0x130   :  { %p841_p13 = scmp.ne.s32.totalorder %s1194_s6, %s840_s21  ;;  %p844_p0 = scmp.lt.u32.totalorder %s840_s21, %s1194_s6 }
 0x132   :  { %p846_p1 = pnand %p844_p0, %p841_p13 }
 0x134   :  { %849 = shalt.err (!%p846_p1)
}
 0x135   :  { %624 = dma.vmem_to_hbm [thread:$0]  %s619_s2, 2048, %s1194_s6, [#allocation5], %s855_s7, %s855_s7, %s856_s8  }
 0x136   :  { %852 = dma.done.wait [#allocation5], 2048  }
 0x137   :  { %853 = vsyncadd [#allocation5], 4294965248 }
 0x138   :  { %628 = vsyncpa [#allocation4], 1 }
 0x139   :  { %629 = vsyncpa [#allocation5], 1 }

</bundles_post_ra>
